<compile_context>
chip_gen: v5e
topology: v5e:2x2
jax: 0.10.0
libtpu: 0.0.40
codegen_flags: <defaults>
</compile_context>

<pallas_src>
import math
from functools import partial

import jax
import jax.numpy as jnp
from jax import lax
from jax.experimental import pallas as pl
from jax.experimental.pallas import tpu as pltpu


# ---------------------------------------------------------------------------
# Kernels
# ---------------------------------------------------------------------------

def _equal_conv2d_kernel_s1(x_ref, w_ref, b_ref, o_ref, *, K, Wp, L):
    """stride==1 fast path.

    x_ref: (1, C, Nb*Hp*Wp)  flattened padded images (batch+spatial on lanes)
    w_ref: (K*K, tO, C)      tap-major weight tile, equalized-LR scale pre-folded
    b_ref: (tO, 1)           f32 bias tile
    o_ref: (1, tO, L)        lane-dense output slab; L = Nb*Hp*Wp - (K-1)*(Wp+1)
    """
    xf = x_ref[0]                                    # (C, Nb*Hp*Wp)
    tO = w_ref.shape[1]
    acc = jnp.zeros((tO, L), jnp.float32)
    # K*K accumulated MXU matmuls; each tap RHS is a contiguous lane-shifted view of xf,
    # so there is no strided slice / reshape relayout inside the loop.
    for kh in range(K):
        for kw in range(K):
            start = kh * Wp + kw
            rhs = xf[:, start:start + L]             # (C, L) contiguous view
            acc = acc + jnp.dot(w_ref[kh * K + kw], rhs,
                                preferred_element_type=jnp.float32)
    acc = acc + b_ref[...]                           # (tO, 1) broadcasts over lanes
    o_ref[0] = acc.astype(o_ref.dtype)


def _equal_conv2d_kernel_general(x_ref, w_ref, b_ref, o_ref, *, K, stride, Ho, Wo):
    """General (stride != 1) fallback: per-tap strided patches, lane-dense output."""
    C = x_ref.shape[1]
    O = w_ref.shape[1]
    x = x_ref[0]                                     # (C, Hp, Wp)
    acc = jnp.zeros((O, Ho * Wo), jnp.float32)
    for kh in range(K):
        for kw in range(K):
            patch = x[:, kh:kh + (Ho - 1) * stride + 1:stride,
                         kw:kw + (Wo - 1) * stride + 1:stride]       # (C, Ho, Wo)
            acc = acc + jnp.dot(w_ref[kh * K + kw], patch.reshape(C, Ho * Wo),
                                preferred_element_type=jnp.float32)
    acc = acc + b_ref[...]
    o_ref[0] = acc.astype(o_ref.dtype)


# ---------------------------------------------------------------------------
# Wrapper
# ---------------------------------------------------------------------------

def _pick_group_batch(N, lanes_per_image, bytes_per_lane, vmem_budget_bytes):
    """Largest divisor Nb of N that keeps per-step blocks within the VMEM budget, while
    keeping >= 2 batch grid steps once the lane dimension is already reasonably dense
    (so a v7x megacore still has something to split)."""
    best = 1
    for nb in range(1, N + 1):
        if N % nb:
            continue
        if nb * lanes_per_image * bytes_per_lane > vmem_budget_bytes:
            break
        if nb > 1 and N // nb < 2 and best * lanes_per_image >= 256:
            break
        best = nb
    return best


def equal_conv2d(x, weight, bias=None, *, stride=1, padding=0, compute_dtype=None):
    """Forward of EqualConv2d. x: (N, Cin, H, W) NCHW; weight: (O, C_w, K, K); bias: (O,)."""
    N, Cin, H, W = x.shape
    O, C_w, K, _ = weight.shape

    # scale uses the *constructor* in_channel (full weight fan-in), like the module.
    scale = 1.0 / math.sqrt(C_w * K * K)
    weight = weight[:, :Cin]                          # channel-slimming support

    Hp, Wp = H + 2 * padding, W + 2 * padding
    Ho = (Hp - K) // stride + 1
    Wo = (Wp - K) // stride + 1

    out_dtype = x.dtype
    out_isz = jnp.dtype(out_dtype).itemsize
    cdt = jnp.dtype(compute_dtype) if compute_dtype is not None else jnp.dtype(x.dtype)

    # Fold the equalized-LR scale into the (tiny) weight once; tap-major layout.
    w_r = (jnp.transpose(weight.astype(jnp.float32) * scale, (2, 3, 0, 1))
           .reshape(K * K, O, Cin).astype(cdt))
    b = bias if bias is not None else jnp.zeros((O,), jnp.float32)
    b_r = b.astype(jnp.float32).reshape(O, 1)

    # Output-channel tiling: keeps the f32 accumulator to a few vregs at real channel counts
    # and gives the v7x megacore more parallel grid steps.
    tO = 256 if (O > 256 and O % 256 == 0) else O
    o_tiles = O // tO

    cost = pl.CostEstimate(
        flops=2 * N * O * Cin * K * K * Ho * Wo,
        transcendentals=0,
        bytes_accessed=int(x.size * x.dtype.itemsize + w_r.size * cdt.itemsize
                           + N * O * Ho * Wo * out_isz),
    )

    if stride == 1:
        # ---------------- fast path (stride == 1) ----------------
        HpWp = Hp * Wp
        bytes_per_lane = 2 * (Cin * cdt.itemsize + tO * out_isz) + tO * 4
        Nb = _pick_group_batch(N, HpWp, bytes_per_lane, vmem_budget_bytes=24 << 20)
        G = N // Nb
        # All K*K shifted views of length L stay in-bounds; the last valid output lane is L-1.
        L = Nb * HpWp - (K - 1) * (Wp + 1)

        # Single wrapper pass over x: pad + group + flatten to (G, C, Nb*Hp*Wp).
        # (Pad/transpose/reshape fuse into one XLA copy; in-kernel halo handling would save
        #  this pass at very large activation sizes but is not worth it here.)
        xp = jnp.pad(x, ((0, 0), (0, 0), (padding, padding), (padding, padding)))
        xp = (xp.reshape(G, Nb, Cin, HpWp).transpose(0, 2, 1, 3)
                .reshape(G, Cin, Nb * HpWp).astype(cdt))

        est = (2 * (Cin * Nb * HpWp * cdt.itemsize + tO * L * out_isz)
               + 2 * w_r.size * cdt.itemsize + (1 << 20))
        vmem_limit = int(min(max(2 * est, 32 << 20), 48 << 20))

        kernel = partial(_equal_conv2d_kernel_s1, K=K, Wp=Wp, L=L)
        out_flat = pl.pallas_call(
            kernel,
            out_shape=jax.ShapeDtypeStruct((G, O, L), out_dtype),
            grid_spec=pltpu.PrefetchScalarGridSpec(
                num_scalar_prefetch=0,
                grid=(G, o_tiles),
                in_specs=[
                    pl.BlockSpec((1, Cin, Nb * HpWp), lambda g, o: (g, 0, 0)),
                    pl.BlockSpec((K * K, tO, Cin), lambda g, o: (0, o, 0)),
                    pl.BlockSpec((tO, 1), lambda g, o: (o, 0)),
                ],
                out_specs=pl.BlockSpec((1, tO, L), lambda g, o: (g, o, 0)),
            ),
            compiler_params=pltpu.CompilerParams(
                dimension_semantics=("parallel", "parallel"),
                vmem_limit_bytes=vmem_limit,
            ),
            cost_estimate=cost,
        )(xp, w_r, b_r)

        # Un-flatten (pure layout plumbing, fused by XLA): lane j of group g maps to
        # (image b, row r, col c) = (j // (Hp*Wp), (j % (Hp*Wp)) // Wp, j % Wp); crop the
        # wrap-around garbage rows/cols and the (K-1)*(Wp+1) tail.
        out_full = jnp.pad(out_flat, ((0, 0), (0, 0), (0, Nb * HpWp - L)))
        out = (out_full.reshape(G, O, Nb, Hp, Wp).transpose(0, 2, 1, 3, 4)
                       .reshape(N, O, Hp, Wp))
        return out[:, :, :Ho, :Wo]

    # ---------------- general fallback (stride != 1) ----------------
    xp = jnp.pad(x, ((0, 0), (0, 0), (padding, padding), (padding, padding))).astype(cdt)
    est = (2 * (Cin * Hp * Wp * cdt.itemsize + O * Ho * Wo * out_isz)
           + 2 * w_r.size * cdt.itemsize + (1 << 20))
    vmem_limit = int(min(max(2 * est, 32 << 20), 48 << 20))

    kernel = partial(_equal_conv2d_kernel_general, K=K, stride=stride, Ho=Ho, Wo=Wo)
    out_flat = pl.pallas_call(
        kernel,
        out_shape=jax.ShapeDtypeStruct((N, O, Ho * Wo), out_dtype),
        grid_spec=pltpu.PrefetchScalarGridSpec(
            num_scalar_prefetch=0,
            grid=(N,),
            in_specs=[
                pl.BlockSpec((1, Cin, Hp, Wp), lambda n: (n, 0, 0, 0)),
                pl.BlockSpec((K * K, O, Cin), lambda n: (0, 0, 0)),
                pl.BlockSpec((O, 1), lambda n: (0, 0)),
            ],
            out_specs=pl.BlockSpec((1, O, Ho * Wo), lambda n: (n, 0, 0)),
        ),
        compiler_params=pltpu.CompilerParams(
            dimension_semantics=("parallel",),
            vmem_limit_bytes=vmem_limit,
        ),
        cost_estimate=cost,
    )(xp, w_r, b_r)
    return out_flat.reshape(N, O, Ho, Wo)


# ---------------------------------------------------------------------------
# Self-test
# ---------------------------------------------------------------------------

if __name__ == "__main__":
    key = jax.random.PRNGKey(0)
    kx, kw = jax.random.split(key)

    N, Cin, H, W = 2, 4, 16, 16
    Cout, K = 8, 3

    x = jax.random.normal(kx, (N, Cin, H, W), dtype=jnp.float32)
    weight = jax.random.normal(kw, (Cout, Cin, K, K), dtype=jnp.float32)   # torch.randn
    bias = jnp.zeros((Cout,), dtype=jnp.float32)                           # torch.zeros

    def reference(x, weight, bias, stride, padding):
        scale = 1.0 / math.sqrt(weight.shape[1] * weight.shape[2] ** 2)
        return lax.conv_general_dilated(
            x, weight * scale, window_strides=(stride, stride),
            padding=[(padding, padding), (padding, padding)],
            dimension_numbers=("NCHW", "OIHW", "NCHW"),
        ) + bias.reshape(1, -1, 1, 1)

    # 1) f32 fast path (stride=1, padding=1) — tight tolerance.
    out = jax.block_until_ready(equal_conv2d(x, weight, bias, stride=1, padding=1))
    ref = reference(x, weight, bias, 1, 1)
    assert out.shape == ref.shape == (N, Cout, H, W), (out.shape, ref.shape)
    assert jnp.allclose(out, ref, atol=1e-4, rtol=1e-4), float(jnp.max(jnp.abs(out - ref)))

    # 2) f32 fast path, padding=0 (exercises the lane-crop logic).
    out0 = jax.block_until_ready(equal_conv2d(x, weight, bias, stride=1, padding=0))
    ref0 = reference(x, weight, bias, 1, 0)
    assert out0.shape == ref0.shape == (N, Cout, H - K + 1, W - K + 1)
    assert jnp.allclose(out0, ref0, atol=1e-4, rtol=1e-4), float(jnp.max(jnp.abs(out0 - ref0)))

    # 3) bf16 MXU operands with f32 accumulation — looser tolerance for operand rounding.
    out_bf = jax.block_until_ready(
        equal_conv2d(x, weight, bias, stride=1, padding=1, compute_dtype=jnp.bfloat16))
    assert out_bf.shape == ref.shape
    assert jnp.allclose(out_bf, ref, atol=1e-1, rtol=1e-1), float(jnp.max(jnp.abs(out_bf - ref)))

    print("KERNEL_OK")
</pallas_src>

<mosaic_0001>
module attributes {stable_mosaic.version = 11 : i64} {
  func.func @_equal_conv2d_kernel_s1(%arg0: i32, %arg1: i32, %arg2: memref<1x4x324xf32, #tpu.memory_space<vmem>>, %arg3: memref<9x8x4xf32, #tpu.memory_space<vmem>>, %arg4: memref<8x1xf32, #tpu.memory_space<vmem>>, %arg5: memref<1x8x286xf32, #tpu.memory_space<vmem>>) attributes {dimension_semantics = [#tpu.dimension_semantics<parallel>, #tpu.dimension_semantics<parallel>], iteration_bounds = array<i64: 2, 1>, scalar_prefetch = 0 : i64, scratch_operands = 0 : i64, tpu.core_type = #tpu.core_type<tc>, window_params = [{transform_indices = @transform_0, window_bounds = array<i64: 1, 4, 324>}, {transform_indices = @transform_1, window_bounds = array<i64: 9, 8, 4>}, {transform_indices = @transform_2, window_bounds = array<i64: 8, 1>}, {transform_indices = @transform_3, window_bounds = array<i64: 1, 8, 286>}]} {
    %c0 = arith.constant 0 : index
    %c0_0 = arith.constant 0 : index
    %c0_1 = arith.constant 0 : index
    %0 = vector.load %arg2[%c0, %c0_0, %c0_1] : memref<1x4x324xf32, #tpu.memory_space<vmem>>, vector<1x4x324xf32>
    %1 = vector.shape_cast %0 : vector<1x4x324xf32> to vector<4x324xf32>
    %cst = arith.constant 0.000000e+00 : f32
    %2 = vector.broadcast %cst : f32 to vector<8x286xf32>
    %3 = vector.extract_strided_slice %1 {offsets = [0, 0], sizes = [4, 286], strides = [1, 1]} : vector<4x324xf32> to vector<4x286xf32>
    %c0_2 = arith.constant 0 : index
    %c0_3 = arith.constant 0 : index
    %c0_4 = arith.constant 0 : index
    %4 = vector.load %arg3[%c0_2, %c0_3, %c0_4] : memref<9x8x4xf32, #tpu.memory_space<vmem>>, vector<1x8x4xf32>
    %5 = vector.shape_cast %4 : vector<1x8x4xf32> to vector<8x4xf32>
    %cst_5 = arith.constant dense<0.000000e+00> : vector<8x286xf32>
    %6 = tpu.matmul %5, %3, %cst_5 {dimension_numbers = #tpu.dot_dimension_numbers<[1], [0], [0], [1], [0, 0, 1, 1], [], []>} : vector<8x4xf32>, vector<4x286xf32>, vector<8x286xf32> -> vector<8x286xf32>
    %7 = arith.addf %2, %6 : vector<8x286xf32>
    %8 = vector.extract_strided_slice %1 {offsets = [0, 1], sizes = [4, 286], strides = [1, 1]} : vector<4x324xf32> to vector<4x286xf32>
    %c1 = arith.constant 1 : index
    %c0_6 = arith.constant 0 : index
    %c0_7 = arith.constant 0 : index
    %9 = vector.load %arg3[%c1, %c0_6, %c0_7] : memref<9x8x4xf32, #tpu.memory_space<vmem>>, vector<1x8x4xf32>
    %10 = vector.shape_cast %9 : vector<1x8x4xf32> to vector<8x4xf32>
    %cst_8 = arith.constant dense<0.000000e+00> : vector<8x286xf32>
    %11 = tpu.matmul %10, %8, %cst_8 {dimension_numbers = #tpu.dot_dimension_numbers<[1], [0], [0], [1], [0, 0, 1, 1], [], []>} : vector<8x4xf32>, vector<4x286xf32>, vector<8x286xf32> -> vector<8x286xf32>
    %12 = arith.addf %7, %11 : vector<8x286xf32>
    %13 = vector.extract_strided_slice %1 {offsets = [0, 2], sizes = [4, 286], strides = [1, 1]} : vector<4x324xf32> to vector<4x286xf32>
    %c2 = arith.constant 2 : index
    %c0_9 = arith.constant 0 : index
    %c0_10 = arith.constant 0 : index
    %14 = vector.load %arg3[%c2, %c0_9, %c0_10] : memref<9x8x4xf32, #tpu.memory_space<vmem>>, vector<1x8x4xf32>
    %15 = vector.shape_cast %14 : vector<1x8x4xf32> to vector<8x4xf32>
    %cst_11 = arith.constant dense<0.000000e+00> : vector<8x286xf32>
    %16 = tpu.matmul %15, %13, %cst_11 {dimension_numbers = #tpu.dot_dimension_numbers<[1], [0], [0], [1], [0, 0, 1, 1], [], []>} : vector<8x4xf32>, vector<4x286xf32>, vector<8x286xf32> -> vector<8x286xf32>
    %17 = arith.addf %12, %16 : vector<8x286xf32>
    %18 = vector.extract_strided_slice %1 {offsets = [0, 18], sizes = [4, 286], strides = [1, 1]} : vector<4x324xf32> to vector<4x286xf32>
    %c3 = arith.constant 3 : index
    %c0_12 = arith.constant 0 : index
    %c0_13 = arith.constant 0 : index
    %19 = vector.load %arg3[%c3, %c0_12, %c0_13] : memref<9x8x4xf32, #tpu.memory_space<vmem>>, vector<1x8x4xf32>
    %20 = vector.shape_cast %19 : vector<1x8x4xf32> to vector<8x4xf32>
    %cst_14 = arith.constant dense<0.000000e+00> : vector<8x286xf32>
    %21 = tpu.matmul %20, %18, %cst_14 {dimension_numbers = #tpu.dot_dimension_numbers<[1], [0], [0], [1], [0, 0, 1, 1], [], []>} : vector<8x4xf32>, vector<4x286xf32>, vector<8x286xf32> -> vector<8x286xf32>
    %22 = arith.addf %17, %21 : vector<8x286xf32>
    %23 = vector.extract_strided_slice %1 {offsets = [0, 19], sizes = [4, 286], strides = [1, 1]} : vector<4x324xf32> to vector<4x286xf32>
    %c4 = arith.constant 4 : index
    %c0_15 = arith.constant 0 : index
    %c0_16 = arith.constant 0 : index
    %24 = vector.load %arg3[%c4, %c0_15, %c0_16] : memref<9x8x4xf32, #tpu.memory_space<vmem>>, vector<1x8x4xf32>
    %25 = vector.shape_cast %24 : vector<1x8x4xf32> to vector<8x4xf32>
    %cst_17 = arith.constant dense<0.000000e+00> : vector<8x286xf32>
    %26 = tpu.matmul %25, %23, %cst_17 {dimension_numbers = #tpu.dot_dimension_numbers<[1], [0], [0], [1], [0, 0, 1, 1], [], []>} : vector<8x4xf32>, vector<4x286xf32>, vector<8x286xf32> -> vector<8x286xf32>
    %27 = arith.addf %22, %26 : vector<8x286xf32>
    %28 = vector.extract_strided_slice %1 {offsets = [0, 20], sizes = [4, 286], strides = [1, 1]} : vector<4x324xf32> to vector<4x286xf32>
    %c5 = arith.constant 5 : index
    %c0_18 = arith.constant 0 : index
    %c0_19 = arith.constant 0 : index
    %29 = vector.load %arg3[%c5, %c0_18, %c0_19] : memref<9x8x4xf32, #tpu.memory_space<vmem>>, vector<1x8x4xf32>
    %30 = vector.shape_cast %29 : vector<1x8x4xf32> to vector<8x4xf32>
    %cst_20 = arith.constant dense<0.000000e+00> : vector<8x286xf32>
    %31 = tpu.matmul %30, %28, %cst_20 {dimension_numbers = #tpu.dot_dimension_numbers<[1], [0], [0], [1], [0, 0, 1, 1], [], []>} : vector<8x4xf32>, vector<4x286xf32>, vector<8x286xf32> -> vector<8x286xf32>
    %32 = arith.addf %27, %31 : vector<8x286xf32>
    %33 = vector.extract_strided_slice %1 {offsets = [0, 36], sizes = [4, 286], strides = [1, 1]} : vector<4x324xf32> to vector<4x286xf32>
    %c6 = arith.constant 6 : index
    %c0_21 = arith.constant 0 : index
    %c0_22 = arith.constant 0 : index
    %34 = vector.load %arg3[%c6, %c0_21, %c0_22] : memref<9x8x4xf32, #tpu.memory_space<vmem>>, vector<1x8x4xf32>
    %35 = vector.shape_cast %34 : vector<1x8x4xf32> to vector<8x4xf32>
    %cst_23 = arith.constant dense<0.000000e+00> : vector<8x286xf32>
    %36 = tpu.matmul %35, %33, %cst_23 {dimension_numbers = #tpu.dot_dimension_numbers<[1], [0], [0], [1], [0, 0, 1, 1], [], []>} : vector<8x4xf32>, vector<4x286xf32>, vector<8x286xf32> -> vector<8x286xf32>
    %37 = arith.addf %32, %36 : vector<8x286xf32>
    %38 = vector.extract_strided_slice %1 {offsets = [0, 37], sizes = [4, 286], strides = [1, 1]} : vector<4x324xf32> to vector<4x286xf32>
    %c7 = arith.constant 7 : index
    %c0_24 = arith.constant 0 : index
    %c0_25 = arith.constant 0 : index
    %39 = vector.load %arg3[%c7, %c0_24, %c0_25] : memref<9x8x4xf32, #tpu.memory_space<vmem>>, vector<1x8x4xf32>
    %40 = vector.shape_cast %39 : vector<1x8x4xf32> to vector<8x4xf32>
    %cst_26 = arith.constant dense<0.000000e+00> : vector<8x286xf32>
    %41 = tpu.matmul %40, %38, %cst_26 {dimension_numbers = #tpu.dot_dimension_numbers<[1], [0], [0], [1], [0, 0, 1, 1], [], []>} : vector<8x4xf32>, vector<4x286xf32>, vector<8x286xf32> -> vector<8x286xf32>
    %42 = arith.addf %37, %41 : vector<8x286xf32>
    %43 = vector.extract_strided_slice %1 {offsets = [0, 38], sizes = [4, 286], strides = [1, 1]} : vector<4x324xf32> to vector<4x286xf32>
    %c8 = arith.constant 8 : index
    %c0_27 = arith.constant 0 : index
    %c0_28 = arith.constant 0 : index
    %44 = vector.load %arg3[%c8, %c0_27, %c0_28] : memref<9x8x4xf32, #tpu.memory_space<vmem>>, vector<1x8x4xf32>
    %45 = vector.shape_cast %44 : vector<1x8x4xf32> to vector<8x4xf32>
    %cst_29 = arith.constant dense<0.000000e+00> : vector<8x286xf32>
    %46 = tpu.matmul %45, %43, %cst_29 {dimension_numbers = #tpu.dot_dimension_numbers<[1], [0], [0], [1], [0, 0, 1, 1], [], []>} : vector<8x4xf32>, vector<4x286xf32>, vector<8x286xf32> -> vector<8x286xf32>
    %47 = arith.addf %42, %46 : vector<8x286xf32>
    %c0_30 = arith.constant 0 : index
    %c0_31 = arith.constant 0 : index
    %48 = vector.load %arg4[%c0_30, %c0_31] : memref<8x1xf32, #tpu.memory_space<vmem>>, vector<8x1xf32>
    %49 = vector.broadcast %48 : vector<8x1xf32> to vector<8x286xf32>
    %50 = arith.addf %47, %49 : vector<8x286xf32>
    %c0_32 = arith.constant 0 : index
    %c0_33 = arith.constant 0 : index
    %c0_34 = arith.constant 0 : index
    %51 = vector.load %arg5[%c0_32, %c0_33, %c0_34] : memref<1x8x286xf32, #tpu.memory_space<vmem>>, vector<1x8x286xf32>
    %52 = vector.shape_cast %51 : vector<1x8x286xf32> to vector<8x286xf32>
    %53 = vector.shape_cast %50 : vector<8x286xf32> to vector<1x8x286xf32>
    tpu.vector_store %arg5[%c0_32, %c0_33, %c0_34], %53 {strides = array<i32>} : memref<1x8x286xf32, #tpu.memory_space<vmem>>, vector<1x8x286xf32>,
    return
  }
  func.func @transform_0(%arg0: i32, %arg1: i32) -> (i32, i32, i32) {
    %c0_i32 = arith.constant 0 : i32
    %c0_i32_0 = arith.constant 0 : i32
    %c0_i32_1 = arith.constant 0 : i32
    return %arg0, %c0_i32, %c0_i32_0 : i32, i32, i32
  }
  func.func @transform_1(%arg0: i32, %arg1: i32) -> (i32, i32, i32) {
    %c0_i32 = arith.constant 0 : i32
    %c0_i32_0 = arith.constant 0 : i32
    %c0_i32_1 = arith.constant 0 : i32
    return %c0_i32, %arg1, %c0_i32_0 : i32, i32, i32
  }
  func.func @transform_2(%arg0: i32, %arg1: i32) -> (i32, i32) {
    %c0_i32 = arith.constant 0 : i32
    %c0_i32_0 = arith.constant 0 : i32
    return %arg1, %c0_i32 : i32, i32
  }
  func.func @transform_3(%arg0: i32, %arg1: i32) -> (i32, i32, i32) {
    %c0_i32 = arith.constant 0 : i32
    %c0_i32_0 = arith.constant 0 : i32
    return %arg0, %arg1, %c0_i32 : i32, i32, i32
  }
}

</mosaic_0001>

<bundles_post_ra>
// kernel: tpu_custom_call.1
= control target key start
LH: loop header
LB: loop body
LE: loop exit
PB: predicated region body
PF: predicated region fallthrough
CT: control target
= control target key end

     0   :  { %8 = vsyncpa [#allocation3], 0  ;;  %s1599_s0 = inlined_call_operand.vmem [shape: f32[2,4,324], index: 0, kind: input, shape index: {}]   ;;  %s1600_s1 = inlined_call_operand.vmem [shape: f32[9,8,4], index: 1, kind: input, shape index: {}]   ;;  %s1601_s2 = inlined_call_operand.vmem [shape: f32[8,1], index: 2, kind: input, shape index: {}]   ;;  %s1602_s3 = inlined_call_operand.hbm [shape: f32[2,8,286], index: 3, kind: output, shape index: {}]  }
   0x1   :  { %10 = vsyncpa [#allocation3 + $0x1], 0  ;;  %s1390_s12 = smov 0   ;;  %s1392_s13 = smov 0  }
   0x2   :  { %s1394_s14 = smov 0   ;;  %s1396_s15 = smov 0  }
   0x3   :  { %s1398_s16 = smov 0   ;;  %s1400_s17 = smov 0  }
   0x4 LB: > { %s1140_s18 = sadd.s32 4294967295, %s1359_s17   ;;  %s1141_s19 = sadd.s32 4294967294, %s1359_s17   ;;  %s1359_s17 = sphi %s1400_s17, %s16_s17   ;;  %s1355_s16 = sphi %s1398_s16, %s1609_s16   ;;  %s1351_s15 = sphi %s1396_s15, %s1608_s15   ;;  %s1347_s14 = sphi %s1394_s14, %s1607_s14   ;;  %s1343_s13 = sphi %s1392_s13, %s1606_s13   ;;  %s1339_s12 = sphi %s1390_s12, %s1605_s12  }
   0x5   : > { %s28_s20 = sadd.s32 1, %s1355_s16  ;;  %s115_s21 = sadd.s32 1, %s1347_s14 }
   0x6   : > { %p30_p0 = scmp.ge.s32.totalorder %s28_s20, 2  ;;  %p125_p1 = scmp.ne.s32.totalorder %s1347_s14, %s1343_s13 }
   0x7   : > { %p126_p2 = scmp.eq.s32.totalorder %s1140_s18, 1  ;;  %p131_p3 = scmp.ne.s32.totalorder %s1343_s13, %s1339_s12 }
   0x8   : > { %s1611_s20 = smov (%p30_p0, %s28_s20), 0  ;;  %p132_p5 = scmp.eq.s32.totalorder %s1141_s19, 1 }
   0x9   : > { %p1430_p4 = por %p126_p2, %p125_p1  ;;  %s110_s23 = ssub.s32 %s1355_s16, %s1611_s20 }
   0xa   : > { %p1146_p6 = scmp.ge.s32.totalorder %s1359_s17, 1  ;;  %p113_p7 = scmp.eq.s32.totalorder %s110_s23, 0 }
   0xb   : > { %p1437_p8 = por %p132_p5, %p131_p3  ;;  %p172_p9 = scmp.lt.s32.totalorder %s1359_s17, 3 }
   0xc   : > { %s1443_s25 = scalar_select %p113_p7, %s1347_s14, %s115_s21  }
   0xd   : > { %p173_p10 = pnand %p1146_p6, %p172_p9 }
   0xe   : > { %p204_p11 = scmp.lt.s32.totalorder (!%p173_p10), %s1351_s15, 1  ;;  %s1361_s4 = smov (!%p173_p10), 127  }
   0xf   : > { %176 = sbr.rel (%p173_p10) target bundleno = 357 (0x165), region = 32  ;;  %s1362_s5 = smov (!%p173_p10), 126  }
  0x10   : > { %s1363_s6 = smov (!%p173_p10), 110   ;;  %s1364_s7 = smov (!%p173_p10), 109  }
  0x11   : > { %s1365_s8 = smov (!%p173_p10), 108   ;;  %s1366_s9 = smov (!%p173_p10), 92  }
  0x12   : > { %s1367_s10 = smov (!%p173_p10), 91   ;;  %s1368_s11 = smov (!%p173_p10), 90  }
  0x13   : > { %s201_s23 = sand.u32 (!%p173_p10), 1, %s1343_s13  }
  0x14   : > { %s205_s26 = scalar_select %p204_p11, %s1351_s15, 1  ;;  %vm243_vm0 = vcmask 1043456   ;;  %vm239_vm1 = vcmask 31744   ;;  %v219_v29 = vld [vmem:[%s1600_s1] sm:$0xff]  ;;  %vm236_vm2 = vcmask 1039360   ;;  %v1148_v31 = vld [vmem:[%s1600_s1 + $0x8] sm:$0xff] }
  0x15   : > { %vm399_vm3 = vcmask 1031168   ;;  %v1161_v36 = vld [vmem:[%s1600_s1 + $0x10] sm:$0xff]  ;;  %vm488_vm4 = vcmask 900096   ;;  %v1168_v46 = vld [vmem:[%s1600_s1 + $0x18] sm:$0xff]  ;;  %vm577_vm5 = vcmask 891904   ;;  %v1175_v52 = vld [vmem:[%s1600_s1 + $0x20] sm:$0xff] }
  0x16   : > { %s1214_s27 = smul.u32 12, %s205_s26  ;;  %v1008_v55 = vld [vmem:[%s1601_s2] sm:$0xff]  ;;  %v1369_v56 = vmov 0   ;;  %vm666_vm6 = vcmask 883712   ;;  %v1182_v59 = vld [vmem:[%s1600_s1 + $0x28] sm:$0xff]  ;;  %vm755_vm7 = vcmask 752640  }
  0x17   : > { %1280 = vset.pattern.permute.xlu0 %v1369_v56  ;;  %vm844_vm8 = vcmask 744448   ;;  %vm933_vm9 = vcmask 736256   ;;  %s1213_s26 = smul.u32 24, %s201_s23  ;;  %vm1019_vm10 = vcmask 244736  }
  0x18   : > { %s208_s30 = scalar_lea.vmem %s1599_s0, %s1214_s27  ;;  %s1215_s27 = smul.u32 24, %s1351_s15 }
  0x19   : > { %v218_v0 = vld [vmem:[%s208_s30 + $0x8] sm:$0xf]  ;;  %v1450_v1 = vld [vmem:[%s208_s30] sm:$0xff] }
  0x1a   : > { %226 = vst [vmem:[#allocation1 + $0x10] ss:$2 sm:$0xff] %v218_v0  ;;  %s1035_s30 = scalar_lea.hbm %s1602_s3, %s1215_s27 }
  0x1b   : > { %224 = vst [vmem:[#allocation1] ss:$2 sm:$0xff] %v1450_v1 }
  0x21   : > { %v229_v2 = vld.sshfl [vmem:[#allocation1 + $0x10] sm:$0xff pattern:$0x75316420] }
  0x22   : > { %234 = vrot.lane.b32.xlu0 %v229_v2, %s1361_s4  ;;  %312 = vst [vmem:[#allocation1 + $0x10] ss:$2 sm:$0xff] %v218_v0  ;;  %v228_v3 = vld.sshfl [vmem:[#allocation1 + $0x8] sm:$0xff pattern:$0x75316420] }
  0x23   : > { %232 = vrot.lane.b32.xlu1 %v228_v3, %s1361_s4  ;;  %v227_v4 = vld.sshfl [vmem:[#allocation1] sm:$0xff pattern:$0x75316420]  ;;  %v1189_v3 = vld [vmem:[%s1600_s1 + $0x30] sm:$0xff] }
  0x24   : > { %310 = vst [vmem:[#allocation1] ss:$2 sm:$0xff] %v1450_v1 }
  0x29   : > { %v1454_v5 = vld.sshfl [vmem:[#allocation1 + $0x10] sm:$0xff pattern:$0x75316420] }
  0x2a   : > { %230 = vrot.lane.b32.xlu0 %v227_v4, %s1361_s4  ;;  %389 = vst [vmem:[#allocation1 + $0x10] ss:$2 sm:$0xff] %v218_v0  ;;  %s203_s4 = scalar_lea.vmem [#allocation2], %s1213_s26 }
  0x2b   : > { %v1456_v6 = vld.sshfl [vmem:[#allocation1] sm:$0xff pattern:$0x75316420]  ;;  %v1458_v7 = vld.sshfl [vmem:[#allocation1 + $0x8] sm:$0xff pattern:$0x75316420] }
  0x2c   : > { %387 = vst [vmem:[#allocation1] ss:$2 sm:$0xff] %v1450_v1  ;;  %1155 = vmatpush.msk.msra.mxu3 %vm243_vm0, %v1456_v6  ;;  %s1037_s15 = sshll.u32 %s203_s4, 4  ;;  %s1038_s15 = int_to_ptr.vmem [resolvable:$true] %s1037_s15 }
  0x2d   : > { %1156 = vmatmul.msk.f32.vlgmr.msra.gmra.mxu3 %vm239_vm1, %v219_v29 }
  0x31   : > { %v392_v8 = vld.sshfl [vmem:[#allocation1 + $0x10] sm:$0xff pattern:$0x75316420] }
  0x32   : > { %478 = vst [vmem:[#allocation1 + $0x10] ss:$2 sm:$0xff] %v218_v0 }
  0x33   : > { %v390_v9 = vld.sshfl [vmem:[#allocation1] sm:$0xff pattern:$0x75316420]  ;;  %v391_v10 = vld.sshfl [vmem:[#allocation1 + $0x8] sm:$0xff pattern:$0x75316420] }
  0x34   : > { %393 = vrot.lane.b32.xlu1 %v390_v9, %s1362_s5  ;;  %476 = vst [vmem:[#allocation1] ss:$2 sm:$0xff] %v1450_v1  ;;  %395 = vrot.lane.b32.xlu2 %v391_v10, %s1362_s5 }
  0x39   : > { %v481_v11 = vld.sshfl [vmem:[#allocation1 + $0x10] sm:$0xff pattern:$0x75316420] }
  0x3a   : > { %567 = vst [vmem:[#allocation1 + $0x10] ss:$2 sm:$0xff] %v218_v0 }
  0x3b   : > { %v480_v12 = vld.sshfl [vmem:[#allocation1 + $0x8] sm:$0xff pattern:$0x75316420]  ;;  %v479_v13 = vld.sshfl [vmem:[#allocation1] sm:$0xff pattern:$0x75316420] }
  0x3c   : > { %486 = vrot.lane.b32.xlu1 %v481_v11, %s1363_s6  ;;  %484 = vrot.lane.b32.xlu0 %v480_v12, %s1363_s6  ;;  %565 = vst [vmem:[#allocation1] ss:$2 sm:$0xff] %v1450_v1 }
  0x3d   : > { %397 = vrot.lane.b32.xlu2 %v392_v8, %s1362_s5  ;;  %s1039_s5 = sshll.u32 %s1035_s30, 4  ;;  %s1040_s5 = int_to_ptr.hbm [resolvable:$true] %s1039_s5 }
  0x41   : > { %v570_v14 = vld.sshfl [vmem:[#allocation1 + $0x10] sm:$0xff pattern:$0x75316420] }
  0x42   : > { %656 = vst [vmem:[#allocation1 + $0x10] ss:$2 sm:$0xff] %v218_v0 }
  0x43   : > { %v569_v15 = vld.sshfl [vmem:[#allocation1 + $0x8] sm:$0xff pattern:$0x75316420]  ;;  %v568_v16 = vld.sshfl [vmem:[#allocation1] sm:$0xff pattern:$0x75316420] }
  0x44   : > { %575 = vrot.lane.b32.xlu0 %v570_v14, %s1364_s7  ;;  %571 = vrot.lane.b32.xlu1 %v568_v16, %s1364_s7  ;;  %654 = vst [vmem:[#allocation1] ss:$2 sm:$0xff] %v1450_v1 }
  0x45   : > { %482 = vrot.lane.b32.xlu2 %v479_v13, %s1363_s6  ;;  %v1203_v13 = vld [vmem:[%s1600_s1 + $0x40] sm:$0xff]  ;;  %s1022_s6 = scalar_lea.sflag [#allocation3], %s201_s23 }
  0x49   : > { %v659_v17 = vld.sshfl [vmem:[#allocation1 + $0x10] sm:$0xff pattern:$0x75316420] }
  0x4a   : > { %745 = vst [vmem:[#allocation1 + $0x10] ss:$2 sm:$0xff] %v218_v0 }
  0x4b   : > { %v658_v18 = vld.sshfl [vmem:[#allocation1 + $0x8] sm:$0xff pattern:$0x75316420]  ;;  %v657_v19 = vld.sshfl [vmem:[#allocation1] sm:$0xff pattern:$0x75316420] }
  0x4c   : > { %662 = vrot.lane.b32.xlu1 %v658_v18, %s1365_s8  ;;  %660 = vrot.lane.b32.xlu0 %v657_v19, %s1365_s8  ;;  %743 = vst [vmem:[#allocation1] ss:$2 sm:$0xff] %v1450_v1 }
  0x4d   : > { %573 = vrot.lane.b32.xlu2 %v569_v15, %s1364_s7  ;;  %s1295_s7 = sshra.s32 %s1040_s5, 4  ;;  %s1296_s7 = int_to_ptr.hbm [resolvable:$true] %s1295_s7 }
  0x4e   : > { %p1302_p1 = scmp.lt.s32.totalorder %s1296_s7, %s1602_s3 }
  0x51   : > { %v748_v20 = vld.sshfl [vmem:[#allocation1 + $0x10] sm:$0xff pattern:$0x75316420] }
  0x52   : > { %834 = vst [vmem:[#allocation1 + $0x10] ss:$2 sm:$0xff] %v218_v0 }
  0x53   : > { %v747_v21 = vld.sshfl [vmem:[#allocation1 + $0x8] sm:$0xff pattern:$0x75316420]  ;;  %v746_v22 = vld.sshfl [vmem:[#allocation1] sm:$0xff pattern:$0x75316420] }
  0x54   : > { %664 = vrot.lane.b32.xlu1 %v659_v17, %s1365_s8  ;;  %751 = vrot.lane.b32.xlu0 %v747_v21, %s1366_s9  ;;  %832 = vst [vmem:[#allocation1] ss:$2 sm:$0xff] %v1450_v1  ;;  %s1297_s8 = scalar_lea.hbm %s1296_s7, 24 }
  0x55   : > { %749 = vrot.lane.b32.xlu2 %v746_v22, %s1366_s9  ;;  %p1298_p12 = scmp.ne.s32.totalorder %s1296_s7, %s1297_s8 }
  0x57   : > { %p1299_p13 = pnand %p1298_p12, %p1430_p4 }
  0x59   : > { %v837_v23 = vld.sshfl [vmem:[#allocation1 + $0x10] sm:$0xff pattern:$0x75316420]  ;;  %p1300_p0 = pneg %p1299_p13 }
  0x5a   : > { %923 = vst [vmem:[#allocation1 + $0x10] ss:$2 sm:$0xff] %v218_v0 }
  0x5b   : > { %v836_v24 = vld.sshfl [vmem:[#allocation1 + $0x8] sm:$0xff pattern:$0x75316420]  ;;  %v835_v25 = vld.sshfl [vmem:[#allocation1] sm:$0xff pattern:$0x75316420] }
  0x5c   : > { %842 = vrot.lane.b32.xlu1 %v837_v23, %s1367_s10  ;;  %840 = vrot.lane.b32.xlu0 %v836_v24, %s1367_s10  ;;  %921 = vst [vmem:[#allocation1] ss:$2 sm:$0xff] %v1450_v1 }
  0x5d   : > { %753 = vrot.lane.b32.xlu2 %v748_v20, %s1366_s9 }
  0x61   : > { %v926_v26 = vld.sshfl [vmem:[#allocation1 + $0x10] sm:$0xff pattern:$0x75316420] }
  0x63   : > { %v924_v27 = vld.sshfl [vmem:[#allocation1] sm:$0xff pattern:$0x75316420]  ;;  %v925_v28 = vld.sshfl [vmem:[#allocation1 + $0x8] sm:$0xff pattern:$0x75316420] }
  0x64   : > { %931 = vrot.lane.b32.xlu0 %v926_v26, %s1368_s11  ;;  %927 = vrot.lane.b32.xlu1 %v924_v27, %s1368_s11 }
  0x65   : > { %838 = vrot.lane.b32.xlu2 %v835_v25, %s1367_s10 }
  0x6c   : > { %1011 = vperm.xlu0 %1280, %v1008_v55  }
  0x6d   : > { %929 = vrot.lane.b32.xlu2 %v925_v28, %s1368_s11  ;;  %s1301_s11 = scalar_lea.hbm %s1602_s3, 48 }
  0x6e   : > { %p1303_p2 = scmp.lt.s32.totalorder %s1301_s11, %s1297_s8 }
  0x70   : > { %p1304_p3 = por %p1303_p2, %p1302_p1 }
  0x72   : > { %p1305_p5 = pnand %p1304_p3, %p1300_p0 }
  0x8e   : > { %v396_v30 = vpop.permute.xlu2 %395 }
  0x94   : > { %v235_v32 = vpop.permute.xlu0 %234 }
  0x95   : > { %v233_v33 = vpop.permute.xlu1 %232  ;;  %1153 = vmatpush.msk.msra.mxu2 %vm243_vm0, %v235_v32 }
  0x96   : > { %v238_v34 = vsel %vm236_vm2, %v233_v33, %v235_v32  ;;  %1154 = vmatmul.msk.f32.vlgmr.msra.gmra.mxu2 %vm239_vm1, %v1148_v31 }
  0x97   : > { %1151 = vmatpush.msk.msra.mxu1 %vm243_vm0, %v238_v34  ;;  %v398_v35 = vpop.permute.xlu2 %397 }
  0x98   : > { %1152 = vmatmul.msk.f32.vlgmr.msra.gmra.mxu1 %vm239_vm1, %v1148_v31  ;;  %v401_v37 = vsel %vm399_vm3, %v396_v30, %v398_v35 }
  0x99   : > { %1164 = vmatpush.msk.msrb.mxu3 %vm243_vm0, %v401_v37  ;;  %1159 = vmatpush.msk.msrb.mxu1 %vm243_vm0, %v1454_v5 }
  0x9a   : > { %1165 = vmatmul.msk.f32.vlgmr.msrb.gmra.mxu3 %vm239_vm1, %v1161_v36 }
  0x9c   : > { %v231_v38 = vpop.permute.xlu0 %230 }
  0x9d   : > { %v237_v39 = vsel %vm236_vm2, %v231_v38, %v233_v33 }
  0x9e   : > { %1149 = vmatpush.msk.msra.mxu0 %vm243_vm0, %v237_v39 }
  0x9f   : > { %1150 = vmatmul.msk.f32.vlgmr.msra.gmra.mxu0 %vm239_vm1, %v1148_v31  ;;  %v483_v40 = vpop.permute.xlu2 %482 }
  0xa0   : > { %1157 = vmatpush.msk.msrb.mxu0 %vm243_vm0, %v1458_v7  ;;  %1160 = vmatmul.msk.f32.vlgmr.msrb.gmra.mxu1 %vm239_vm1, %v219_v29  ;;  %v1196_v7 = vld [vmem:[%s1600_s1 + $0x38] sm:$0xff] }
  0xa2   : > { %1166 = vmatpush.msk.msra.mxu0 %vm243_vm0, %v398_v35 }
  0xa6   : > { %v394_v41 = vpop.permute.xlu1 %393 }
  0xa7   : > { %v400_v42 = vsel %vm399_vm3, %v394_v41, %v396_v30  ;;  %1158 = vmatmul.msk.f32.vlgmr.msrb.gmra.mxu0 %vm239_vm1, %v219_v29  ;;  %v574_v43 = vpop.permute.xlu2 %573 }
  0xa8   : > { %1162 = vmatpush.msk.msrb.mxu2 %vm243_vm0, %v400_v42 }
  0xa9   : > { %1163 = vmatmul.msk.f32.vlgmr.msrb.gmra.mxu2 %vm239_vm1, %v1161_v36 }
  0xae   : > { %v487_v44 = vpop.permute.xlu1 %486  ;;  %v485_v45 = vpop.permute.xlu0 %484 }
  0xaf   : > { %v490_v47 = vsel %vm488_vm4, %v485_v45, %v487_v44  ;;  %v489_v48 = vsel %vm488_vm4, %v483_v40, %v485_v45  ;;  %1173 = vmatpush.msk.msra.mxu3 %vm243_vm0, %v487_v44  ;;  %1167 = vmatmul.msk.f32.vlgmr.msra.gmra.mxu0 %vm239_vm1, %v1161_v36  ;;  %v750_v49 = vpop.permute.xlu2 %749 }
  0xb0   : > { %1169 = vmatpush.msk.msra.mxu1 %vm243_vm0, %v489_v48  ;;  %1171 = vmatpush.msk.msra.mxu2 %vm243_vm0, %v490_v47  ;;  %v342_v19 = vpop.f32.mrf.mxu3 }
  0xb1   : > { %1172 = vmatmul.msk.f32.vlgmr.msra.gmra.mxu2 %vm239_vm1, %v1168_v46  ;;  %1170 = vmatmul.msk.f32.vlgmr.msra.gmra.mxu1 %vm239_vm1, %v1168_v46 }
  0xb2   : > { %1174 = vmatmul.msk.f32.vlgmr.msra.gmra.mxu3 %vm239_vm1, %v1168_v46 }
  0xb6   : > { %v576_v50 = vpop.permute.xlu0 %575  ;;  %v572_v51 = vpop.permute.xlu1 %571 }
  0xb7   : > { %v579_v53 = vsel %vm577_vm5, %v574_v43, %v576_v50  ;;  %v578_v54 = vsel %vm577_vm5, %v572_v51, %v574_v43  ;;  %1180 = vmatpush.msk.msrb.mxu2 %vm243_vm0, %v576_v50  ;;  %v754_v61 = vpop.permute.xlu2 %753 }
  0xb8   : > { %1176 = vmatpush.msk.msrb.mxu0 %vm243_vm0, %v578_v54  ;;  %1178 = vmatpush.msk.msrb.mxu1 %vm243_vm0, %v579_v53 }
  0xb9   : > { %1181 = vmatmul.msk.f32.vlgmr.msrb.gmra.mxu2 %vm239_vm1, %v1175_v52  ;;  %1177 = vmatmul.msk.f32.vlgmr.msrb.gmra.mxu0 %vm239_vm1, %v1175_v52 }
  0xba   : > { %1179 = vmatmul.msk.f32.vlgmr.msrb.gmra.mxu1 %vm239_vm1, %v1175_v52 }
  0xbe   : > { %v663_v57 = vpop.permute.xlu1 %662  ;;  %v661_v58 = vpop.permute.xlu0 %660 }
  0xbf   : > { %v667_v60 = vsel %vm666_vm6, %v661_v58, %v663_v57  ;;  %v839_v4 = vpop.permute.xlu2 %838 }
  0xc0   : > { %1183 = vmatpush.msk.msrb.mxu3 %vm243_vm0, %v667_v60 }
  0xc1   : > { %1184 = vmatmul.msk.f32.vlgmr.msrb.gmra.mxu3 %vm239_vm1, %v1182_v59 }
  0xc6   : > { %v665_v62 = vpop.permute.xlu1 %664  ;;  %v752_v63 = vpop.permute.xlu0 %751 }
  0xc7   : > { %v668_v0 = vsel %vm666_vm6, %v663_v57, %v665_v62  ;;  %v756_v1 = vsel %vm755_vm7, %v750_v49, %v752_v63  ;;  %v757_v2 = vsel %vm755_vm7, %v752_v63, %v754_v61  ;;  %1187 = vmatpush.msk.msra.mxu1 %vm243_vm0, %v665_v62  ;;  %v930_v10 = vpop.permute.xlu2 %929 }
  0xc8   : > { %1185 = vmatpush.msk.msra.mxu0 %vm243_vm0, %v668_v0  ;;  %1188 = vmatmul.msk.f32.vlgmr.msra.gmra.mxu1 %vm239_vm1, %v1182_v59 }
  0xc9   : > { %1190 = vmatpush.msk.msra.mxu2 %vm243_vm0, %v756_v1  ;;  %1192 = vmatpush.msk.msra.mxu3 %vm243_vm0, %v757_v2 }
  0xca   : > { %1186 = vmatmul.msk.f32.vlgmr.msra.gmra.mxu0 %vm239_vm1, %v1182_v59  ;;  %1191 = vmatmul.msk.f32.vlgmr.msra.gmra.mxu2 %vm239_vm1, %v1189_v3 }
  0xcb   : > { %1193 = vmatmul.msk.f32.vlgmr.msra.gmra.mxu3 %vm239_vm1, %v1189_v3  ;;  %1194 = vmatpush.msk.msrb.mxu0 %vm243_vm0, %v754_v61 }
  0xce   : > { %v843_v5 = vpop.permute.xlu1 %842  ;;  %v841_v6 = vpop.permute.xlu0 %840 }
  0xcf   : > { %v846_v8 = vsel %vm844_vm8, %v841_v6, %v843_v5  ;;  %v845_v9 = vsel %vm844_vm8, %v839_v4, %v841_v6  ;;  %1201 = vmatpush.msk.msrb.mxu3 %vm243_vm0, %v843_v5 }
  0xd0   : > { %1197 = vmatpush.msk.msrb.mxu1 %vm243_vm0, %v845_v9  ;;  %1199 = vmatpush.msk.msrb.mxu2 %vm243_vm0, %v846_v8 }
  0xd1   : > { %1198 = vmatmul.msk.f32.vlgmr.msrb.gmra.mxu1 %vm239_vm1, %v1196_v7 }
  0xd2   : > { %1195 = vmatmul.msk.f32.vlgmr.msrb.gmra.mxu0 %vm239_vm1, %v1189_v3  ;;  %1200 = vmatmul.msk.f32.vlgmr.msrb.gmra.mxu2 %vm239_vm1, %v1196_v7 }
  0xd3   : > { %1202 = vmatmul.msk.f32.vlgmr.msrb.gmra.mxu3 %vm239_vm1, %v1196_v7 }
  0xd6   : > { %v932_v11 = vpop.permute.xlu0 %931  ;;  %v928_v12 = vpop.permute.xlu1 %927 }
  0xd7   : > { %v935_v14 = vsel %vm933_vm9, %v930_v10, %v932_v11  ;;  %v934_v15 = vsel %vm933_vm9, %v928_v12, %v930_v10  ;;  %1208 = vmatpush.msk.msra.mxu2 %vm243_vm0, %v932_v11 }
  0xd8   : > { %1204 = vmatpush.msk.msra.mxu0 %vm243_vm0, %v934_v15  ;;  %1206 = vmatpush.msk.msra.mxu1 %vm243_vm0, %v935_v14 }
  0xd9   : > { %1207 = vmatmul.msk.f32.vlgmr.msra.gmra.mxu1 %vm239_vm1, %v1203_v13 }
  0xda   : > { %1205 = vmatmul.msk.f32.vlgmr.msra.gmra.mxu0 %vm239_vm1, %v1203_v13  ;;  %1209 = vmatmul.msk.f32.vlgmr.msra.gmra.mxu2 %vm239_vm1, %v1203_v13 }
  0xde   : > { %v1012_v59 = vpop.permute.xlu0 %1011 }
 0x115   : > { %v287_v16 = vpop.f32.mrf.mxu1 }
 0x119   : > { %v307_v18 = vpop.f32.mrf.mxu2 }
 0x11c   : > { %v267_v17 = vpop.f32.mrf.mxu0 }
 0x11d   : > { %v382_v20 = vpop.f32.mrf.mxu1  ;;  %v448_v23 = vpop.f32.mrf.mxu3  ;;  %v343_v30 = vadd.f32 %v342_v19, %v267_v17 }
 0x11e   : > { %v383_v41 = vadd.f32 %v382_v20, %v307_v18 }
 0x124   : > { %v362_v21 = vpop.f32.mrf.mxu0 }
 0x125   : > { %v363_v34 = vadd.f32 %v362_v21, %v287_v16 }
 0x127   : > { %v472_v37 = vadd.f32 %v448_v23, %v363_v34 }
 0x12c   : > { %v428_v22 = vpop.f32.mrf.mxu2  ;;  %v468_v25 = vpop.f32.mrf.mxu0 }
 0x12d   : > { %v471_v36 = vadd.f32 %v428_v22, %v343_v30  ;;  %v473_v48 = vadd.f32 %v468_v25, %v383_v41 }
 0x12e   : > { %v517_v24 = vpop.f32.mrf.mxu1 }
 0x12f   : > { %v560_v38 = vadd.f32 %v517_v24, %v471_v36 }
 0x134   : > { %v537_v26 = vpop.f32.mrf.mxu2 }
 0x135   : > { %v557_v27 = vpop.f32.mrf.mxu3  ;;  %v561_v39 = vadd.f32 %v537_v26, %v472_v37 }
 0x136   : > { %v606_v29 = vpop.f32.mrf.mxu0  ;;  %v562_v51 = vadd.f32 %v557_v27, %v473_v48 }
 0x137   : > { %v626_v28 = vpop.f32.mrf.mxu1  ;;  %v649_v42 = vadd.f32 %v606_v29, %v560_v38 }
 0x138   : > { %v650_v46 = vadd.f32 %v626_v28, %v561_v39 }
 0x13c   : > { %v646_v31 = vpop.f32.mrf.mxu2 }
 0x13d   : > { %v651_v54 = vadd.f32 %v646_v31, %v562_v51 }
 0x144   : > { %v695_v32 = vpop.f32.mrf.mxu3 }
 0x145   : > { %v735_v33 = vpop.f32.mrf.mxu1  ;;  %v738_v47 = vadd.f32 %v695_v32, %v649_v42 }
 0x146   : > { %v740_v60 = vadd.f32 %v735_v33, %v651_v54 }
 0x147   : > { %v715_v35 = vpop.f32.mrf.mxu0 }
 0x148   : > { %v739_v49 = vadd.f32 %v715_v35, %v650_v46 }
 0x14d   : > { %v784_v40 = vpop.f32.mrf.mxu2 }
 0x14e   : > { %v873_v43 = vpop.f32.mrf.mxu1  ;;  %v804_v44 = vpop.f32.mrf.mxu3  ;;  %v827_v50 = vadd.f32 %v784_v40, %v738_v47 }
 0x14f   : > { %v824_v45 = vpop.f32.mrf.mxu0  ;;  %v828_v52 = vadd.f32 %v804_v44, %v739_v49 }
 0x150   : > { %v916_v55 = vadd.f32 %v873_v43, %v827_v50  ;;  %v829_v0 = vadd.f32 %v824_v45, %v740_v60 }
 0x155   : > { %v893_v53 = vpop.f32.mrf.mxu2 }
 0x156   : > { %v917_v56 = vadd.f32 %v893_v53, %v828_v52  ;;  %v982_v57 = vpop.f32.mrf.mxu1  ;;  %v913_v63 = vpop.f32.mrf.mxu3 }
 0x157   : > { %v962_v58 = vpop.f32.mrf.mxu0  ;;  %v918_v3 = vadd.f32 %v913_v63, %v829_v0 }
 0x158   : > { %v1005_v61 = vadd.f32 %v962_v58, %v916_v55  ;;  %v1006_v62 = vadd.f32 %v982_v57, %v917_v56 }
 0x15a   : > { %v1014_v1 = vadd.f32 %v1012_v59, %v1005_v61  ;;  %v1015_v2 = vadd.f32 %v1012_v59, %v1006_v62 }
 0x15c   : > { %1017 = vst [vmem:[%s203_s4] sm:$0xff] %v1014_v1 }
 0x15d   : > { %1018 = vst [vmem:[%s203_s4 + $0x8] sm:$0xff] %v1015_v2  ;;  %v1002_v4 = vpop.f32.mrf.mxu2 }
 0x15e   : > { %v1007_v5 = vadd.f32 %v1002_v4, %v918_v3 }
 0x160   : > { %v1016_v6 = vadd.f32 %v1012_v59, %v1007_v5 }
 0x162   : > { %1020 = vst.msk [vmem:[%s203_s4 + $0x10] sm:$0xff] %vm1019_vm10, %v1016_v6 }
 0x163   : > { %1308 = shalt.err (!%p1305_p5)
}
 0x164   : > { %1216 = dma.vmem_to_hbm [thread:$0]  (%p1430_p4), %s1038_s15, 384, %s1040_s5, %s1022_s6  }
 0x165 PF: > { %p1222_p6 = scmp.ge.s32.totalorder %s1359_s17, 2  ;;  %s1051_s21 = sand.u32 1, %s1339_s12  }
 0x166   : > { %s1052_s23 = scalar_lea.sflag [#allocation3], %s1051_s21 }
 0x167   : > { %p1219_p7 = pnand %p1222_p6, %p1437_p8 }
 0x169   : > { %p1220_p9 = pneg %p1219_p7 }
 0x16b   : > { %1334 = dma.done.wait (%p1220_p9), %s1052_s23, 384  }
 0x16c   : > { %1336 = vsyncadd (%p1220_p9), %s1052_s23, 4294966912  ;;  %s16_s17 = sadd.s32 1, %s1359_s17   ;;  %s1605_s12 = smov %s1343_s13 }
 0x16d   : > { %p13_p10 = scmp.ge.s32.totalorder %s16_s17, 4   ;;  %s1606_s13 = smov %s1347_s14 }
 0x16e   : > { %s1607_s14 = smov %s1443_s25  ;;  %s1608_s15 = smov %s1355_s16 }
 0x16f   : > { %s1609_s16 = smov %s1611_s20  ;;  %15 = sbr.rel (!%p13_p10) target bundleno = 4 (0x4), region = 90 }
 0x174   :  { %1058 = vsyncpa [#allocation3], 1 }
 0x175   :  { %1060 = vsyncpa [#allocation3 + $0x1], 1 }

</bundles_post_ra>
